<compile_context>
chip_gen: v6e
topology: v6e:2x2x1
jax: 0.10.0
libtpu: 0.0.40
codegen_flags: <defaults>
</compile_context>

<pallas_src>
import jax
import jax.numpy as jnp
import numpy as np
from jax.experimental import pallas as pl
from jax.experimental.pallas import tpu as pltpu


def _round_up(x, m):
    return (x + m - 1) // m * m


def _mm_bias_relu_kernel(p_ref, w_ref, b_ref, o_ref):
    """Single-K-step variant (no accumulator scratch).

    p_ref: (TM, TK)  bf16 im2col patch tile
    w_ref: (TK, TCo) bf16 conv weight with BN scale folded in
    b_ref: (1, TCo)  f32 folded BN bias
    o_ref: (TM, TCo) output tile (x.dtype)
    """
    acc = jnp.dot(p_ref[...], w_ref[...], preferred_element_type=jnp.float32)
    o_ref[...] = jnp.maximum(acc + b_ref[...], 0.0).astype(o_ref.dtype)


def _mm_bias_relu_acc_kernel(p_ref, w_ref, b_ref, o_ref, acc_ref):
    """K-tiled variant: f32 VMEM accumulator, reduction axis last."""
    k = pl.program_id(3)

    @pl.when(k == 0)
    def _():
        acc_ref[...] = jnp.zeros_like(acc_ref)

    acc_ref[...] += jnp.dot(p_ref[...], w_ref[...],
                            preferred_element_type=jnp.float32)

    @pl.when(k == pl.num_programs(3) - 1)
    def _():
        o_ref[...] = jnp.maximum(acc_ref[...] + b_ref[...],
                                 0.0).astype(o_ref.dtype)


def _im2col(x, KH, KW, stride):
    """x: (N, H, W, Cin) -> patches (N, Ho, Wo, KH*KW*Cin), tap-major order."""
    N, H, W, Cin = x.shape
    Ho = (H - KH) // stride + 1
    Wo = (W - KW) // stride + 1
    taps = []
    for kh in range(KH):
        for kw in range(KW):
            taps.append(jax.lax.slice(
                x,
                (0, kh, kw, 0),
                (N, kh + (Ho - 1) * stride + 1, kw + (Wo - 1) * stride + 1, Cin),
                (1, stride, stride, 1)))
    return jnp.concatenate(taps, axis=-1), Ho, Wo


def conv_bn_relu(x, w, scale, bias, *, stride=1, padding=0,
                 compute_dtype=jnp.bfloat16):
    """Fused Conv2d + eval-mode BatchNorm2d + ReLU.

    x:     (N, H, W, Cin)       NHWC input
    w:     (KH, KW, Cin, Cout)  HWIO conv weight
    scale: (Cout,)              folded BN scale = gamma / sqrt(var + eps)
    bias:  (Cout,)              folded BN bias  = beta - mean * scale
    Returns (N, Ho, Wo, Cout) in x.dtype.

    Note: operands are intentionally quantized to bf16 (patches + folded
    weights) with f32 accumulation — a precision choice vs. PyTorch f32 conv.
    """
    out_dtype = x.dtype
    N, H, W, Cin = x.shape
    KH, KW, _, Cout = w.shape

    # bf16 BEFORE im2col/pad: the im2col gather then happens entirely in bf16.
    x = x.astype(compute_dtype)
    if padding:
        x = jnp.pad(x, ((0, 0), (padding, padding), (padding, padding), (0, 0)))

    scale = jnp.asarray(scale, jnp.float32).reshape(1, 1, 1, Cout)
    bias = jnp.asarray(bias, jnp.float32).reshape(1, Cout)

    # Fold the BN scale into the conv weights (eval-mode BatchNorm).
    w_folded = (w.astype(jnp.float32) * scale).reshape(KH * KW * Cin, Cout)

    # im2col in the wrapper so the kernel performs ONE lane-dense MXU matmul
    # per tile with contraction K = KH*KW*Cin.
    patches, Ho, Wo = _im2col(x, KH, KW, stride)          # (N, Ho, Wo, K) bf16
    K = KH * KW * Cin
    P = Ho * Wo
    patches = patches.reshape(N, P, K)

    # ---------------- tiling ----------------
    K128 = _round_up(K, 128)
    Co128 = _round_up(Cout, 128)

    # Keep the folded weight fully VMEM-resident when it is small enough: the
    # weight block index is then constant -> DMA'd exactly once, K axis
    # collapses, no accumulator scratch.
    weight_resident = (K128 <= 2048) and (K128 * Co128 * 2 <= (4 << 20))
    if weight_resident:
        TK, TCo = K128, Co128
    else:
        TK = min(512, K128)
        TCo = min(512, Co128)
    K_pad = _round_up(K, TK)          # pad K up; never shrink TK for awkward K
    Co_pad = _round_up(Cout, TCo)
    n_j = Co_pad // TCo
    n_k = K_pad // TK

    # Pixel tiles: 256-512 to fill the MXU and amortize per-step overhead;
    # shrink only if the parallel grid would leave a v7x TensorCore idle.
    TM = min(512, _round_up(P, 128))
    if TM > 128 and N * (_round_up(P, TM) // TM) * n_j < 2:
        TM = 128
    P_pad = _round_up(P, TM)

    patches = jnp.pad(patches, ((0, 0), (0, P_pad - P), (0, K_pad - K)))
    w2d = jnp.pad(w_folded,
                  ((0, K_pad - K), (0, Co_pad - Cout))).astype(compute_dtype)
    bias_p = jnp.pad(bias, ((0, 0), (0, Co_pad - Cout)))  # (1, Co_pad) f32

    out_itemsize = jnp.dtype(out_dtype).itemsize
    cost = pl.CostEstimate(
        flops=2 * N * P * K * Cout,
        transcendentals=0,
        bytes_accessed=(patches.size * patches.dtype.itemsize
                        + w2d.size * w2d.dtype.itemsize
                        + bias_p.size * 4
                        + N * P_pad * Co_pad * out_itemsize))

    # VMEM budget from the actual tile footprint (double-buffered blocks plus
    # the accumulator), capped so it also fits v7x's 64 MiB physical VMEM.
    vmem_est = (2 * TM * TK * 2 + 2 * TK * TCo * 2
                + 2 * TM * TCo * out_itemsize + 2 * TCo * 4
                + (TM * TCo * 4 if n_k > 1 else 0))
    vmem_limit = int(min(max(2 * vmem_est, 32 << 20), 64 << 20))

    if n_k == 1:
        grid = (N, P_pad // TM, n_j)
        kernel = _mm_bias_relu_kernel
        in_specs = [
            pl.BlockSpec((None, TM, TK), lambda n, i, j: (n, i, 0)),
            pl.BlockSpec((TK, TCo), lambda n, i, j: (0, j)),
            pl.BlockSpec((1, TCo), lambda n, i, j: (0, j)),
        ]
        out_specs = pl.BlockSpec((None, TM, TCo), lambda n, i, j: (n, i, j))
        scratch_shapes = []
        dim_sem = ("parallel", "parallel", "parallel")
    else:
        grid = (N, P_pad // TM, n_j, n_k)
        kernel = _mm_bias_relu_acc_kernel
        in_specs = [
            pl.BlockSpec((None, TM, TK), lambda n, i, j, k: (n, i, k)),
            pl.BlockSpec((TK, TCo), lambda n, i, j, k: (k, j)),
            pl.BlockSpec((1, TCo), lambda n, i, j, k: (0, j)),
        ]
        out_specs = pl.BlockSpec((None, TM, TCo), lambda n, i, j, k: (n, i, j))
        scratch_shapes = [pltpu.VMEM((TM, TCo), jnp.float32)]
        dim_sem = ("parallel", "parallel", "parallel", "arbitrary")

    out = pl.pallas_call(
        kernel,
        out_shape=jax.ShapeDtypeStruct((N, P_pad, Co_pad), out_dtype),
        grid=grid,
        in_specs=in_specs,
        out_specs=out_specs,
        scratch_shapes=scratch_shapes,
        compiler_params=pltpu.CompilerParams(
            dimension_semantics=dim_sem,
            vmem_limit_bytes=vmem_limit),
        cost_estimate=cost,
    )(patches, w2d, bias_p)

    # Slice away K/Cout/pixel padding; dtype already matches x.dtype.
    return out[:, :P, :Cout].reshape(N, Ho, Wo, Cout)


if __name__ == "__main__":
    # ConvBNRelu(in_channels=4, out_channels=8, kernel_size=3)
    # -> Conv2d(4, 8, 3, stride=1, padding=0, bias=False) + BN(8) + ReLU (eval)
    N, Cin, H, W = 2, 4, 16, 16
    Cout, Ksz = 8, 3
    stride, padding = 1, 0
    eps = 1e-5

    key = jax.random.PRNGKey(0)
    kx, kw, kg, kb, km, kv = jax.random.split(key, 6)

    x_nhwc = jax.random.normal(kx, (N, H, W, Cin), dtype=jnp.float32)
    w_oihw = jax.random.normal(kw, (Cout, Cin, Ksz, Ksz), dtype=jnp.float32) * 0.1
    gamma = jax.random.uniform(kg, (Cout,), minval=0.5, maxval=1.5)
    beta = jax.random.normal(kb, (Cout,)) * 0.1
    running_mean = jax.random.normal(km, (Cout,)) * 0.1
    running_var = jax.random.uniform(kv, (Cout,), minval=0.5, maxval=1.5)

    # PyTorch OIHW -> HWIO for the NHWC kernel.
    w_hwio = jnp.transpose(w_oihw, (2, 3, 1, 0))

    # Fold eval-mode BatchNorm into per-channel scale / bias.
    scale = gamma / jnp.sqrt(running_var + eps)
    bias = beta - running_mean * scale

    out = conv_bn_relu(x_nhwc, w_hwio, scale, bias, stride=stride,
                       padding=padding)
    out = jax.block_until_ready(out)

    # Pure-JAX reference using the same bf16 operand quantization (bf16 input
    # gather + bf16 folded weight) with f32 accumulation.
    w_ref = (w_hwio * scale.reshape(1, 1, 1, Cout)).astype(jnp.bfloat16)
    ref = jax.lax.conv_general_dilated(
        x_nhwc.astype(jnp.bfloat16), w_ref,
        window_strides=(stride, stride), padding="VALID",
        dimension_numbers=("NHWC", "HWIO", "NHWC"),
        preferred_element_type=jnp.float32)
    ref = jnp.maximum(ref + bias.reshape(1, 1, 1, Cout), 0.0).astype(x_nhwc.dtype)

    np.testing.assert_allclose(np.asarray(out), np.asarray(ref),
                               rtol=1e-2, atol=1e-2)
    print("KERNEL_OK")
</pallas_src>

<mosaic_0001>
module attributes {stable_mosaic.version = 11 : i64} {
  func.func @_mm_bias_relu_kernel(%arg0: i32, %arg1: i32, %arg2: i32, %arg3: memref<1x256x128xbf16, #tpu.memory_space<vmem>>, %arg4: memref<128x128xbf16, #tpu.memory_space<vmem>>, %arg5: memref<1x128xf32, #tpu.memory_space<vmem>>, %arg6: memref<1x256x128xf32, #tpu.memory_space<vmem>>) attributes {dimension_semantics = [#tpu.dimension_semantics<parallel>, #tpu.dimension_semantics<parallel>, #tpu.dimension_semantics<parallel>], iteration_bounds = array<i64: 2, 1, 1>, scalar_prefetch = 0 : i64, scratch_operands = 0 : i64, tpu.core_type = #tpu.core_type<tc>, window_params = [{transform_indices = @transform_0, window_bounds = array<i64: 1, 256, 128>}, {transform_indices = @transform_1, window_bounds = array<i64: 128, 128>}, {transform_indices = @transform_2, window_bounds = array<i64: 1, 128>}, {transform_indices = @transform_3, window_bounds = array<i64: 1, 256, 128>}]} {
    %c0 = arith.constant 0 : index
    %c0_0 = arith.constant 0 : index
    %c0_1 = arith.constant 0 : index
    %0 = vector.load %arg3[%c0, %c0_0, %c0_1] : memref<1x256x128xbf16, #tpu.memory_space<vmem>>, vector<1x256x128xbf16>
    %1 = vector.shape_cast %0 : vector<1x256x128xbf16> to vector<256x128xbf16>
    %c0_2 = arith.constant 0 : index
    %c0_3 = arith.constant 0 : index
    %2 = vector.load %arg4[%c0_2, %c0_3] : memref<128x128xbf16, #tpu.memory_space<vmem>>, vector<128x128xbf16>
    %cst = arith.constant dense<0.000000e+00> : vector<256x128xf32>
    %3 = tpu.matmul %1, %2, %cst {dimension_numbers = #tpu.dot_dimension_numbers<[1], [0], [0], [1], [0, 0, 1, 1], [], []>} : vector<256x128xbf16>, vector<128x128xbf16>, vector<256x128xf32> -> vector<256x128xf32>
    %c0_4 = arith.constant 0 : index
    %c0_5 = arith.constant 0 : index
    %4 = vector.load %arg5[%c0_4, %c0_5] : memref<1x128xf32, #tpu.memory_space<vmem>>, vector<1x128xf32>
    %5 = vector.broadcast %4 : vector<1x128xf32> to vector<256x128xf32>
    %6 = arith.addf %3, %5 : vector<256x128xf32>
    %cst_6 = arith.constant 0.000000e+00 : f32
    %7 = vector.broadcast %cst_6 : f32 to vector<256x128xf32>
    %8 = arith.maximumf %6, %7 : vector<256x128xf32>
    %c0_7 = arith.constant 0 : index
    %c0_8 = arith.constant 0 : index
    %c0_9 = arith.constant 0 : index
    %9 = vector.load %arg6[%c0_7, %c0_8, %c0_9] : memref<1x256x128xf32, #tpu.memory_space<vmem>>, vector<1x256x128xf32>
    %10 = vector.shape_cast %9 : vector<1x256x128xf32> to vector<256x128xf32>
    %11 = vector.shape_cast %8 : vector<256x128xf32> to vector<1x256x128xf32>
    tpu.vector_store %arg6[%c0_7, %c0_8, %c0_9], %11 {strides = array<i32>} : memref<1x256x128xf32, #tpu.memory_space<vmem>>, vector<1x256x128xf32>,
    return
  }
  func.func @transform_0(%arg0: i32, %arg1: i32, %arg2: i32) -> (i32, i32, i32) {
    %c0_i32 = arith.constant 0 : i32
    %c0_i32_0 = arith.constant 0 : i32
    return %arg0, %arg1, %c0_i32 : i32, i32, i32
  }
  func.func @transform_1(%arg0: i32, %arg1: i32, %arg2: i32) -> (i32, i32) {
    %c0_i32 = arith.constant 0 : i32
    %c0_i32_0 = arith.constant 0 : i32
    return %c0_i32, %arg2 : i32, i32
  }
  func.func @transform_2(%arg0: i32, %arg1: i32, %arg2: i32) -> (i32, i32) {
    %c0_i32 = arith.constant 0 : i32
    %c0_i32_0 = arith.constant 0 : i32
    return %c0_i32, %arg2 : i32, i32
  }
  func.func @transform_3(%arg0: i32, %arg1: i32, %arg2: i32) -> (i32, i32, i32) {
    %c0_i32 = arith.constant 0 : i32
    return %arg0, %arg1, %arg2 : i32, i32, i32
  }
}

</mosaic_0001>

<bundles_post_ra>
// kernel: tpu_custom_call.1
= control target key start
LH: loop header
LB: loop body
LE: loop exit
PB: predicated region body
PF: predicated region fallthrough
CT: control target
= control target key end

     0   :  { %8 = vsyncpa [#allocation3], 0  ;;  %s1490_s0 = inlined_call_operand.hbm [shape: bf16[2,256,128], index: 0, kind: input, shape index: {}]   ;;  %s1491_s1 = inlined_call_operand.hbm [shape: bf16[128,128], index: 1, kind: input, shape index: {}]   ;;  %s1492_s2 = inlined_call_operand.vmem [shape: f32[1,128], index: 2, kind: input, shape index: {}]   ;;  %s1493_s3 = inlined_call_operand.hbm [shape: f32[2,256,128], index: 3, kind: output, shape index: {}]  }
   0x1   :  { %10 = vsyncpa [#allocation3 + $0x1], 0 }
   0x2   :  { %11 = vsyncpa [#allocation6], 0 }
   0x3   :  { %12 = vsyncpa [#allocation4], 0 }
   0x4   :  { %14 = vsyncpa [#allocation4 + $0x1], 0  ;;  %s1212_s12 = smov 0   ;;  %s1214_s13 = smov 0  }
   0x5   :  { %s1216_s14 = smov 0   ;;  %s1218_s15 = smov 0  }
   0x6   :  { %s1220_s16 = smov 0   ;;  %s1222_s17 = smov 0  }
   0x7 LB: > { %s811_s18 = sadd.s32 4294967295, %s1183_s17   ;;  %s812_s19 = sadd.s32 4294967294, %s1183_s17   ;;  %s1183_s17 = sphi %s1222_s17, %s20_s17   ;;  %s1179_s16 = sphi %s1220_s16, %s1515_s16   ;;  %s1175_s15 = sphi %s1218_s15, %s1514_s15   ;;  %s1171_s14 = sphi %s1216_s14, %s1513_s14   ;;  %s1167_s13 = sphi %s1214_s13, %s1512_s13   ;;  %s1163_s12 = sphi %s1212_s12, %s1511_s12  }
   0x8   : > { %p61_p0 = scmp.ne.s32.totalorder %s1167_s13, %s1163_s12  ;;  %p1246_p1 = scmp.eq.s32.totalorder %s811_s18, 0 }
   0x9   : > { %p1250_p2 = scmp.eq.s32.totalorder %s811_s18, 1  ;;  %p147_p3 = scmp.eq.s32.totalorder %s812_s19, 1 }
   0xa   : > { %p1256_p4 = por %p1246_p1, %p61_p0  ;;  %p813_p5 = scmp.ge.s32.totalorder %s1183_s17, 1 }
   0xb   : > { %p1261_p6 = por %p147_p3, %p61_p0  ;;  %p154_p7 = scmp.lt.s32.totalorder %s1183_s17, 3 }
   0xc   : > { %s1499_s22 = scalar_select %p1256_p4, 1, 0 }
   0xd   : > { %s1500_s23 = scalar_select %p1261_p6, 1, 0 }
   0xe   : > { %p1266_p8 = pnand %p813_p5, %p154_p7  ;;  %s1185_s25 = smov [#allocation5]  }
   0xf   : > { %s168_s26 = sshll.u32 %s1185_s25, 4  ;;  %s39_s28 = sadd.s32 1, %s1179_s16  ;;  %s169_s26 = int_to_ptr.vmem [resolvable:$true] %s168_s26 }
  0x10   : > { %p952_p9 = pneg %p1266_p8  ;;  %s1056_s29 = scalar_lea.vmem %s169_s26, 1024 }
  0x11   : > { %p1057_p13 = scmp.ne.s32.totalorder %s169_s26, %s1056_s29  ;;  %p1064_p5 = scmp.lt.s32.totalorder %s169_s26, %s169_s26 }
  0x12   : > { %p1275_p11 = pnand %p952_p9, %p1246_p1  ;;  %p1065_p7 = scmp.lt.s32.totalorder %s1056_s29, %s1056_s29 }
  0x14   : > { %p1047_p12 = pneg %p1275_p11  ;;  %p1066_p6 = por %p1065_p7, %p1064_p5 }
  0x16   : > { %p1059_p0 = pnand %p1057_p13, %p1047_p12 }
  0x18   : > { %p1060_p3 = pneg %p1059_p0 }
  0x1a   : > { %p1067_p4 = pnand %p1066_p6, %p1060_p3 }
  0x1c   : > { %1070 = shalt.err (!%p1067_p4)
}
  0x1d   : > { %s1495_s30 = smov 64   ;;  %s1496_s4 = smov 4  }
  0x1e   : > { %955 = dma.hbm_to_vmem [thread:$0]  (!%p1275_p11), %s1491_s1, 1024, %s169_s26, [#allocation6], %s1495_s30, %s1495_s30, %s1496_s4  }
  0x1f   : > { %p41_p4 = scmp.ge.s32.totalorder %s39_s28, 2  ;;  %s48_s7 = sadd.s32 1, %s1171_s14 }
  0x20   : > { %p55_p6 = scmp.ne.s32.totalorder %s1171_s14, %s1167_s13  ;;  %p56_p9 = scmp.eq.s32.totalorder %s1183_s17, 0 }
  0x21   : > { %s1517_s28 = smov (%p41_p4, %s39_s28), 0  ;;  %p965_p0 = scmp.lt.s32.totalorder %s1183_s17, 2 }
  0x22   : > { %p1296_p12 = por %p56_p9, %p55_p6  ;;  %p1302_p13 = por %p1250_p2, %p55_p6 }
  0x23   : > { %s43_s10 = ssub.s32 %s1179_s16, %s1517_s28  ;;  %s188_s11 = sand.u32 1, %s1171_s14  }
  0x24   : > { %p46_p11 = scmp.eq.s32.totalorder %s43_s10, 0  ;;  %s817_s18 = sshll.u32 %s188_s11, 7 }
  0x25   : > { %s854_s25 = sshll.u32 %s1179_s16, 11  ;;  %s192_s5 = scalar_lea.vmem [#allocation2], %s817_s18 }
  0x26   : > { %s1311_s19 = scalar_select %p46_p11, %s1171_s14, %s48_s7  }
  0x27   : > { %s200_s29 = scalar_lea.hbm %s1490_s0, %s854_s25  ;;  %s201_s6 = sshll.u32 %s192_s5, 4  ;;  %s202_s6 = int_to_ptr.vmem [resolvable:$true] %s201_s6 }
  0x28   : > { %p1319_p2 = pnand %p965_p0, %p1296_p12  ;;  %s189_s30 = scalar_lea.sflag [#allocation3], %s188_s11 }
  0x29   : > { %s1084_s10 = scalar_lea.vmem %s202_s6, 2048  ;;  %s1188_s7 = smov [#allocation2]  }
  0x2a   : > { %p1073_p3 = pneg %p1319_p2  ;;  %p1085_p5 = scmp.ne.s32.totalorder %s202_s6, %s1084_s10 }
  0x2b   : > { %s1089_s4 = sshll.u32 %s1188_s7, 4  ;;  %s1090_s4 = int_to_ptr.vmem [resolvable:$false] %s1089_s4 }
  0x2c   : > { %p1087_p7 = pnand %p1085_p5, %p1073_p3  ;;  %s1091_s25 = scalar_lea.vmem %s1090_s4, 4096 }
  0x2d   : > { %p1092_p6 = scmp.lt.s32.totalorder %s202_s6, %s1090_s4  ;;  %p1093_p9 = scmp.lt.s32.totalorder %s1091_s25, %s1084_s10 }
  0x2e   : > { %p1088_p4 = pneg %p1087_p7 }
  0x2f   : > { %p1094_p11 = por %p1093_p9, %p1092_p6 }
  0x31   : > { %p1095_p10 = pnand %p1094_p11, %p1088_p4 }
  0x33   : > { %1098 = shalt.err (!%p1095_p10)
}
  0x34   : > { %s1506_s8 = smov 4   ;;  %s1507_s18 = smov 64  }
  0x35   : > { %959 = dma.hbm_to_vmem [thread:$0]  (!%p1319_p2), %s200_s29, 2048, %s202_s6, %s189_s30, %s1507_s18, %s1507_s18, %s1506_s8  }
  0x36   : > { %213 = sbr.rel (%p1266_p8) target bundleno = 336 (0x150), region = 32  ;;  %s1333_s11 = sand.u32 (!%p1266_p8), 1, %s1167_s13  }
  0x37   : > { %s821_s4 = sshll.u32 (!%p1266_p8), %s1333_s11, 7  ;;  %s216_s26 = scalar_lea.sflag (!%p1266_p8), [#allocation3], %s1333_s11 }
  0x38   : > { %s1337_s27 = scalar_lea.vmem (!%p1266_p8), [#allocation2], %s821_s4  ;;  %p1508_p10 = scmp.ne.s32.totalorder (!%p1266_p8), %s1499_s22, 0 }
  0x3b   : > { %1150 = dma.done.wait (%p1508_p10), %s216_s26, 2048  }
  0x3c   : > { %1152 = vsyncadd (%p1508_p10), %s216_s26, 4294965248 }
  0x3d   : > { %1154 = dma.done.wait (%p1246_p1), [#allocation6], 1024  }
  0x3e   : > { %1156 = vsyncadd (%p1246_p1), [#allocation6], 4294966272  ;;  %v1021_v0 = vld [vmem:[#allocation5 + $0x38] sm:$0xff]   ;;  %v1022_v1 = vld [vmem:[#allocation5 + $0x30] sm:$0xff]   ;;  %s823_s24 = sshll.u32 %s1333_s11, 8  ;;  %s855_s29 = sshll.u32 %s1175_s15, 12 }
  0x3f   : > { %880 = vmatprep.subr.bf16.mxu0 %v1021_v0  ;;  %928 = vmatprep.subr.bf16.mxu1 %v1021_v0  ;;  %v1023_v2 = vld [vmem:[#allocation5 + $0x28] sm:$0xff]   ;;  %v1024_v3 = vld [vmem:[#allocation5 + $0x20] sm:$0xff]   ;;  %v1025_v6 = vld [vmem:[#allocation5 + $0x18] sm:$0xff]   ;;  %s1373_s30 = scalar_lea.vmem [#allocation7], %s823_s24  ;;  %s1436_s10 = scalar_lea.hbm %s1493_s3, %s855_s29 }
  0x40   : > { %881 = vmatpush3.bf16.msra.mxu0 %v1021_v0  ;;  %936 = vmatpush3.bf16.msra.mxu1 %v1021_v0  ;;  %v1029_v4 = vld [vmem:[%s1337_s27] sm:$0xff]   ;;  %v1026_v7 = vld [vmem:[#allocation5 + $0x10] sm:$0xff]   ;;  %v1027_v8 = vld [vmem:[#allocation5 + $0x8] sm:$0xff]   ;;  %s696_s5 = sshll.u32 %s1373_s30, 4  ;;  %s680_s15 = scalar_lea.sflag [#allocation4], %s1333_s11  ;;  %s1438_s5 = int_to_ptr.vmem [resolvable:$true] %s696_s5 }
  0x41   : > { %882 = vmatprep.subr.bf16.mxu0 %v1022_v1  ;;  %929 = vmatprep.subr.bf16.mxu1 %v1022_v1  ;;  %v1030_v5 = vld [vmem:[%s1337_s27 + $0x40] sm:$0xff]   ;;  %v1031_v10 = vld [vmem:[%s1337_s27 + $0x8] sm:$0xff]   ;;  %v1033_v12 = vld [vmem:[%s1337_s27 + $0x10] sm:$0xff]   ;;  %s1099_s7 = scalar_lea.vmem %s1438_s5, 4096  ;;  %s1189_s25 = smov [#allocation7]  }
  0x42   : > { %896 = vmatprep.mubr.bf16.mxu0 %v1029_v4  ;;  %912 = vmatprep.mubr.bf16.mxu1 %v1030_v5  ;;  %v1028_v9 = vld [vmem:[#allocation5] sm:$0xff]   ;;  %v1032_v11 = vld [vmem:[%s1337_s27 + $0x48] sm:$0xff]   ;;  %v1034_v13 = vld [vmem:[%s1337_s27 + $0x50] sm:$0xff]   ;;  %p1100_p1 = scmp.ne.s32.totalorder %s1438_s5, %s1099_s7  ;;  %s1103_s8 = sshll.u32 %s1189_s25, 4  ;;  %s1104_s8 = int_to_ptr.vmem [resolvable:$false] %s1103_s8 }
  0x43   : > { %v1035_v14 = vld [vmem:[%s1337_s27 + $0x18] sm:$0xff]   ;;  %v1037_v16 = vld [vmem:[%s1337_s27 + $0x20] sm:$0xff]   ;;  %v1039_v18 = vld [vmem:[%s1337_s27 + $0x28] sm:$0xff]   ;;  %s1105_s18 = scalar_lea.vmem %s1104_s8, 8192  ;;  %p1106_p0 = scmp.lt.s32.totalorder %s1438_s5, %s1104_s8 }
  0x44   : > { %883 = vmatpush3.bf16.msra.mxu0 %v1022_v1  ;;  %937 = vmatpush3.bf16.msra.mxu1 %v1022_v1  ;;  %v1036_v15 = vld [vmem:[%s1337_s27 + $0x58] sm:$0xff]   ;;  %v1038_v17 = vld [vmem:[%s1337_s27 + $0x60] sm:$0xff]   ;;  %v1040_v19 = vld [vmem:[%s1337_s27 + $0x68] sm:$0xff]   ;;  %p1101_p8 = pnand %p1100_p1, %p1302_p13  ;;  %p1107_p2 = scmp.lt.s32.totalorder %s1105_s18, %s1099_s7 }
  0x45   : > { %884 = vmatprep.subr.bf16.mxu0 %v1023_v2  ;;  %930 = vmatprep.subr.bf16.mxu1 %v1023_v2  ;;  %v1041_v20 = vld [vmem:[%s1337_s27 + $0x30] sm:$0xff]   ;;  %v1043_v22 = vld [vmem:[%s1337_s27 + $0x38] sm:$0xff]   ;;  %v1366_v24 = vld [vmem:[%s1492_s2] ss:$0 sm:$0xff] }
  0x46   : > { %v1042_v21 = vld [vmem:[%s1337_s27 + $0x70] sm:$0xff]   ;;  %v1044_v23 = vld [vmem:[%s1337_s27 + $0x78] sm:$0xff]   ;;  %p1102_p12 = pneg %p1101_p8  ;;  %p1108_p3 = por %p1107_p2, %p1106_p0 }
  0x48   : > { %885 = vmatpush3.bf16.msra.mxu0 %v1023_v2  ;;  %938 = vmatpush3.bf16.msra.mxu1 %v1023_v2  ;;  %p1109_p5 = pnand %p1108_p3, %p1102_p12 }
  0x49   : > { %886 = vmatprep.subr.bf16.mxu0 %v1024_v3  ;;  %931 = vmatprep.subr.bf16.mxu1 %v1024_v3 }
  0x4c   : > { %887 = vmatpush3.bf16.msra.mxu0 %v1024_v3  ;;  %939 = vmatpush3.bf16.msra.mxu1 %v1024_v3 }
  0x4d   : > { %888 = vmatprep.subr.bf16.mxu0 %v1025_v6  ;;  %932 = vmatprep.subr.bf16.mxu1 %v1025_v6 }
  0x50   : > { %889 = vmatpush3.bf16.msra.mxu0 %v1025_v6  ;;  %940 = vmatpush3.bf16.msra.mxu1 %v1025_v6 }
  0x51   : > { %890 = vmatprep.subr.bf16.mxu0 %v1026_v7  ;;  %933 = vmatprep.subr.bf16.mxu1 %v1026_v7 }
  0x54   : > { %891 = vmatpush3.bf16.msra.mxu0 %v1026_v7  ;;  %941 = vmatpush3.bf16.msra.mxu1 %v1026_v7 }
  0x55   : > { %892 = vmatprep.subr.bf16.mxu0 %v1027_v8  ;;  %934 = vmatprep.subr.bf16.mxu1 %v1027_v8 }
  0x58   : > { %893 = vmatpush3.bf16.msra.mxu0 %v1027_v8  ;;  %942 = vmatpush3.bf16.msra.mxu1 %v1027_v8 }
  0x59   : > { %894 = vmatprep.subr.bf16.mxu0 %v1028_v9  ;;  %935 = vmatprep.subr.bf16.mxu1 %v1028_v9 }
  0x5c   : > { %895 = vmatpush3.bf16.msra.mxu0 %v1028_v9  ;;  %943 = vmatpush3.bf16.msra.mxu1 %v1028_v9 }
  0x5f   : > { %897 = vmatmul.mubr.bf16.vlgmr.msra.gmra.mxu0 %v1031_v10  ;;  %913 = vmatmul.mubr.bf16.vlgmr.msra.gmra.mxu1 %v1032_v11 }
  0x60   : > { %900 = vmatprep.mubr.bf16.mxu0 %v1033_v12  ;;  %916 = vmatprep.mubr.bf16.mxu1 %v1034_v13 }
  0x67   : > { %901 = vmatmul.mubr.bf16.gmra.mxu0 %v1035_v14  ;;  %917 = vmatmul.mubr.bf16.gmra.mxu1 %v1036_v15 }
  0x68   : > { %904 = vmatprep.mubr.bf16.mxu0 %v1037_v16  ;;  %920 = vmatprep.mubr.bf16.mxu1 %v1038_v17 }
  0x6f   : > { %905 = vmatmul.mubr.bf16.gmra.mxu0 %v1039_v18  ;;  %921 = vmatmul.mubr.bf16.gmra.mxu1 %v1040_v19 }
  0x70   : > { %908 = vmatprep.mubr.bf16.mxu0 %v1041_v20  ;;  %924 = vmatprep.mubr.bf16.mxu1 %v1042_v21 }
  0x77   : > { %909 = vmatmul.mubr.bf16.gmra.mxu0 %v1043_v22  ;;  %925 = vmatmul.mubr.bf16.gmra.mxu1 %v1044_v23 }
 0x11f   : > { %v898_v25 = vpop.f32.mrf.mxu0  ;;  %v914_v26 = vpop.f32.mrf.mxu1 }
 0x120   : > { %v497_v27 = vadd.f32 %v898_v25, %v1366_v24  ;;  %v561_v28 = vadd.f32 %v914_v26, %v1366_v24 }
 0x121   : > { %v488_v29 = vpop.f32.mrf.mxu0  ;;  %v552_v30 = vpop.f32.mrf.mxu1 }
 0x122   : > { %v617_v31 = vmax.f32 %v497_v27, 0.0  ;;  %v633_v32 = vmax.f32 %v561_v28, 0.0  ;;  %v489_v33 = vadd.f32 %v1366_v24, %v488_v29  ;;  %v553_v34 = vadd.f32 %v1366_v24, %v552_v30 }
 0x123   : > { %v899_v35 = vpop.f32.mrf.mxu0  ;;  %v915_v36 = vpop.f32.mrf.mxu1 }
 0x124   : > { %649 = vst [vmem:[%s1373_s30 + $0x10] sm:$0xff] %v617_v31  ;;  %665 = vst [vmem:[%s1373_s30 + $0x90] sm:$0xff] %v633_v32  ;;  %v615_v37 = vmax.f32 %v489_v33, 0.0  ;;  %v631_v38 = vmax.f32 %v553_v34, 0.0  ;;  %v500_v39 = vadd.f32 %v899_v35, %v1366_v24  ;;  %v564_v40 = vadd.f32 %v915_v36, %v1366_v24 }
 0x125   : > { %v491_v41 = vpop.f32.mrf.mxu0  ;;  %v555_v42 = vpop.f32.mrf.mxu1 }
 0x126   : > { %647 = vst [vmem:[%s1373_s30] sm:$0xff] %v615_v37  ;;  %663 = vst [vmem:[%s1373_s30 + $0x80] sm:$0xff] %v631_v38  ;;  %v618_v43 = vmax.f32 %v500_v39, 0.0  ;;  %v634_v44 = vmax.f32 %v564_v40, 0.0  ;;  %v492_v45 = vadd.f32 %v1366_v24, %v491_v41  ;;  %v556_v46 = vadd.f32 %v1366_v24, %v555_v42 }
 0x127   : > { %v902_v47 = vpop.f32.mrf.mxu0  ;;  %v918_v48 = vpop.f32.mrf.mxu1 }
 0x128   : > { %650 = vst [vmem:[%s1373_s30 + $0x18] sm:$0xff] %v618_v43  ;;  %666 = vst [vmem:[%s1373_s30 + $0x98] sm:$0xff] %v634_v44  ;;  %v616_v49 = vmax.f32 %v492_v45, 0.0  ;;  %v632_v50 = vmax.f32 %v556_v46, 0.0  ;;  %v513_v51 = vadd.f32 %v902_v47, %v1366_v24  ;;  %v577_v52 = vadd.f32 %v918_v48, %v1366_v24 }
 0x129   : > { %v504_v53 = vpop.f32.mrf.mxu0  ;;  %v568_v54 = vpop.f32.mrf.mxu1 }
 0x12a   : > { %648 = vst [vmem:[%s1373_s30 + $0x8] sm:$0xff] %v616_v49  ;;  %664 = vst [vmem:[%s1373_s30 + $0x88] sm:$0xff] %v632_v50  ;;  %v621_v55 = vmax.f32 %v513_v51, 0.0  ;;  %v637_v56 = vmax.f32 %v577_v52, 0.0  ;;  %v505_v57 = vadd.f32 %v1366_v24, %v504_v53  ;;  %v569_v58 = vadd.f32 %v1366_v24, %v568_v54 }
 0x12b   : > { %v903_v59 = vpop.f32.mrf.mxu0  ;;  %v919_v60 = vpop.f32.mrf.mxu1 }
 0x12c   : > { %653 = vst [vmem:[%s1373_s30 + $0x30] sm:$0xff] %v621_v55  ;;  %669 = vst [vmem:[%s1373_s30 + $0xb0] sm:$0xff] %v637_v56  ;;  %v619_v61 = vmax.f32 %v505_v57, 0.0  ;;  %v635_v62 = vmax.f32 %v569_v58, 0.0  ;;  %v516_v63 = vadd.f32 %v903_v59, %v1366_v24  ;;  %v580_v0 = vadd.f32 %v919_v60, %v1366_v24 }
 0x12d   : > { %v507_v1 = vpop.f32.mrf.mxu0  ;;  %v571_v2 = vpop.f32.mrf.mxu1 }
 0x12e   : > { %651 = vst [vmem:[%s1373_s30 + $0x20] sm:$0xff] %v619_v61  ;;  %667 = vst [vmem:[%s1373_s30 + $0xa0] sm:$0xff] %v635_v62  ;;  %v622_v3 = vmax.f32 %v516_v63, 0.0  ;;  %v638_v4 = vmax.f32 %v580_v0, 0.0  ;;  %v508_v5 = vadd.f32 %v1366_v24, %v507_v1  ;;  %v572_v6 = vadd.f32 %v1366_v24, %v571_v2 }
 0x12f   : > { %v906_v7 = vpop.f32.mrf.mxu0  ;;  %v922_v8 = vpop.f32.mrf.mxu1 }
 0x130   : > { %654 = vst [vmem:[%s1373_s30 + $0x38] sm:$0xff] %v622_v3  ;;  %670 = vst [vmem:[%s1373_s30 + $0xb8] sm:$0xff] %v638_v4  ;;  %v620_v9 = vmax.f32 %v508_v5, 0.0  ;;  %v636_v10 = vmax.f32 %v572_v6, 0.0  ;;  %v529_v11 = vadd.f32 %v906_v7, %v1366_v24  ;;  %v593_v12 = vadd.f32 %v922_v8, %v1366_v24 }
 0x131   : > { %v520_v13 = vpop.f32.mrf.mxu0  ;;  %v584_v14 = vpop.f32.mrf.mxu1 }
 0x132   : > { %652 = vst [vmem:[%s1373_s30 + $0x28] sm:$0xff] %v620_v9  ;;  %668 = vst [vmem:[%s1373_s30 + $0xa8] sm:$0xff] %v636_v10  ;;  %v625_v15 = vmax.f32 %v529_v11, 0.0  ;;  %v641_v16 = vmax.f32 %v593_v12, 0.0  ;;  %v521_v17 = vadd.f32 %v1366_v24, %v520_v13  ;;  %v585_v18 = vadd.f32 %v1366_v24, %v584_v14 }
 0x133   : > { %v907_v19 = vpop.f32.mrf.mxu0  ;;  %v923_v20 = vpop.f32.mrf.mxu1 }
 0x134   : > { %657 = vst [vmem:[%s1373_s30 + $0x50] sm:$0xff] %v625_v15  ;;  %673 = vst [vmem:[%s1373_s30 + $0xd0] sm:$0xff] %v641_v16  ;;  %v623_v21 = vmax.f32 %v521_v17, 0.0  ;;  %v639_v22 = vmax.f32 %v585_v18, 0.0  ;;  %v532_v23 = vadd.f32 %v907_v19, %v1366_v24  ;;  %v596_v25 = vadd.f32 %v923_v20, %v1366_v24 }
 0x135   : > { %v523_v26 = vpop.f32.mrf.mxu0  ;;  %v587_v27 = vpop.f32.mrf.mxu1 }
 0x136   : > { %655 = vst [vmem:[%s1373_s30 + $0x40] sm:$0xff] %v623_v21  ;;  %671 = vst [vmem:[%s1373_s30 + $0xc0] sm:$0xff] %v639_v22  ;;  %v626_v28 = vmax.f32 %v532_v23, 0.0  ;;  %v642_v29 = vmax.f32 %v596_v25, 0.0  ;;  %v524_v30 = vadd.f32 %v1366_v24, %v523_v26  ;;  %v588_v31 = vadd.f32 %v1366_v24, %v587_v27 }
 0x137   : > { %v910_v32 = vpop.f32.mrf.mxu0  ;;  %v926_v33 = vpop.f32.mrf.mxu1 }
 0x138   : > { %658 = vst [vmem:[%s1373_s30 + $0x58] sm:$0xff] %v626_v28  ;;  %674 = vst [vmem:[%s1373_s30 + $0xd8] sm:$0xff] %v642_v29  ;;  %v624_v34 = vmax.f32 %v524_v30, 0.0  ;;  %v640_v35 = vmax.f32 %v588_v31, 0.0  ;;  %v545_v36 = vadd.f32 %v910_v32, %v1366_v24  ;;  %v609_v37 = vadd.f32 %v926_v33, %v1366_v24 }
 0x139   : > { %v536_v38 = vpop.f32.mrf.mxu0  ;;  %v600_v39 = vpop.f32.mrf.mxu1 }
 0x13a   : > { %656 = vst [vmem:[%s1373_s30 + $0x48] sm:$0xff] %v624_v34  ;;  %672 = vst [vmem:[%s1373_s30 + $0xc8] sm:$0xff] %v640_v35  ;;  %v629_v40 = vmax.f32 %v545_v36, 0.0  ;;  %v645_v41 = vmax.f32 %v609_v37, 0.0  ;;  %v537_v42 = vadd.f32 %v1366_v24, %v536_v38  ;;  %v601_v43 = vadd.f32 %v1366_v24, %v600_v39 }
 0x13b   : > { %v911_v44 = vpop.f32.mrf.mxu0  ;;  %v927_v45 = vpop.f32.mrf.mxu1 }
 0x13c   : > { %661 = vst [vmem:[%s1373_s30 + $0x70] sm:$0xff] %v629_v40  ;;  %677 = vst [vmem:[%s1373_s30 + $0xf0] sm:$0xff] %v645_v41  ;;  %v627_v46 = vmax.f32 %v537_v42, 0.0  ;;  %v643_v47 = vmax.f32 %v601_v43, 0.0  ;;  %v548_v48 = vadd.f32 %v911_v44, %v1366_v24  ;;  %v612_v49 = vadd.f32 %v927_v45, %v1366_v24 }
 0x13d   : > { %v539_v50 = vpop.f32.mrf.mxu0  ;;  %v603_v51 = vpop.f32.mrf.mxu1 }
 0x13e   : > { %659 = vst [vmem:[%s1373_s30 + $0x60] sm:$0xff] %v627_v46  ;;  %675 = vst [vmem:[%s1373_s30 + $0xe0] sm:$0xff] %v643_v47  ;;  %v630_v52 = vmax.f32 %v548_v48, 0.0  ;;  %v646_v53 = vmax.f32 %v612_v49, 0.0  ;;  %v540_v54 = vadd.f32 %v1366_v24, %v539_v50  ;;  %v604_v55 = vadd.f32 %v1366_v24, %v603_v51 }
 0x140   : > { %662 = vst [vmem:[%s1373_s30 + $0x78] sm:$0xff] %v630_v52  ;;  %678 = vst [vmem:[%s1373_s30 + $0xf8] sm:$0xff] %v646_v53  ;;  %v628_v56 = vmax.f32 %v540_v54, 0.0  ;;  %v644_v57 = vmax.f32 %v604_v55, 0.0 }
 0x142   : > { %660 = vst [vmem:[%s1373_s30 + $0x68] sm:$0xff] %v628_v56  ;;  %676 = vst [vmem:[%s1373_s30 + $0xe8] sm:$0xff] %v644_v57 }
 0x143   : > { %1112 = shalt.err (!%p1109_p5)
}
 0x144   : > { %s1113_s4 = scalar_lea.hbm %s1436_s10, 4096  ;;  %s1117_s20 = scalar_lea.hbm %s1493_s3, 8192 }
 0x145   : > { %p1114_p7 = scmp.ne.s32.totalorder %s1436_s10, %s1113_s4  ;;  %p1118_p9 = scmp.lt.s32.totalorder %s1436_s10, %s1493_s3 }
 0x146   : > { %p1119_p11 = scmp.lt.s32.totalorder %s1117_s20, %s1113_s4 }
 0x147   : > { %p1115_p4 = pnand %p1114_p7, %p1302_p13 }
 0x148   : > { %p1120_p10 = por %p1119_p11, %p1118_p9 }
 0x149   : > { %p1116_p6 = pneg %p1115_p4 }
 0x14b   : > { %p1121_p1 = pnand %p1120_p10, %p1116_p6 }
 0x14d   : > { %1124 = shalt.err (!%p1121_p1)
}
 0x14e   : > { %s1190_s30 = smov 128   ;;  %s1191_s29 = smov 8  }
 0x14f   : > { %950 = dma.vmem_to_hbm [thread:$0]  (%p1302_p13), %s1438_s5, 4096, %s1436_s10, %s680_s15, %s1190_s30, %s1190_s30, %s1191_s29  }
 0x150 PF: > { %s711_s6 = sand.u32 1, %s1163_s12   ;;  %p1509_p8 = scmp.ne.s32.totalorder %s1500_s23, 0 }
 0x151   : > { %p1510_p12 = scmp.ge.s32.totalorder %s1183_s17, 2  ;;  %s712_s21 = scalar_lea.sflag [#allocation4], %s711_s6 }
 0x153   : > { %p961_p0 = pnand %p1510_p12, %p1509_p8 }
 0x155   : > { %p962_p2 = pneg %p961_p0 }
 0x157   : > { %1158 = dma.done.wait (%p962_p2), %s712_s21, 4096  }
 0x158   : > { %1160 = vsyncadd (%p962_p2), %s712_s21, 4294963200  ;;  %s20_s17 = sadd.s32 1, %s1183_s17   ;;  %s1511_s12 = smov %s1167_s13 }
 0x159   : > { %p17_p3 = scmp.ge.s32.totalorder %s20_s17, 4   ;;  %s1512_s13 = smov %s1171_s14 }
 0x15a   : > { %s1513_s14 = smov %s1311_s19  ;;  %s1514_s15 = smov %s1179_s16 }
 0x15b   : > { %s1515_s16 = smov %s1517_s28  ;;  %19 = sbr.rel (!%p17_p3) target bundleno = 7 (0x7), region = 85 }
 0x160   :  { %717 = vsyncpa [#allocation3], 1 }
 0x161   :  { %719 = vsyncpa [#allocation3 + $0x1], 1 }
 0x162   :  { %720 = vsyncpa [#allocation6], 1 }
 0x163   :  { %721 = vsyncpa [#allocation4], 1 }
 0x164   :  { %723 = vsyncpa [#allocation4 + $0x1], 1 }

</bundles_post_ra>
